<compile_context>
chip_gen: v7x
topology: tpu7x:2x2x1
jax: 0.10.0
libtpu: 0.0.40
codegen_flags: <defaults>
</compile_context>

<pallas_src>
import jax
import jax.numpy as jnp
from jax.experimental import pallas as pl
from jax.experimental.pallas import tpu as pltpu


def _mf_dot_kernel(u_ref, v_ref, out_ref):
    """Per-row dot product of two (TILE_B, K) tiles.

    u_ref, v_ref : (TILE_B, K) float32
    out_ref      : (1, TILE_B) float32  (lane-dense row of per-row sums)
    """
    prod = u_ref[...] * v_ref[...]              # VPU elementwise multiply
    s = jnp.sum(prod, axis=1)                   # lane reduce -> (TILE_B,)
    out_ref[...] = s[None, :]                   # store as one dense (1, TILE_B) row


def init_params(key, num_users, num_items, embedding_k):
    """Deterministic synthetic parameters matching the PyTorch module shapes."""
    ku, ki = jax.random.split(key, 2)
    scale = 0.1
    return {
        "user_emb": jax.random.normal(ku, (num_users, embedding_k), jnp.float32) * scale,
        "item_emb": jax.random.normal(ki, (num_items, embedding_k), jnp.float32) * scale,
    }


def mf_forward(x, params, *, max_tile_b=4096):
    """x: (B, 2) int32 rows of [user_idx, item_idx].

    Returns (out, user_embed, item_embed):
      out        : (B, 1) float32
      user_embed : (B, K) float32
      item_embed : (B, K) float32
    """
    user_idx = x[:, 0]
    item_idx = x[:, 1]
    user_embed = jnp.take(params["user_emb"], user_idx, axis=0)   # (B, K)
    item_embed = jnp.take(params["item_emb"], item_idx, axis=0)   # (B, K)

    B, K = user_embed.shape

    # Batch tile: multiple of 128 (lane-dense output), capped for VMEM headroom
    # (double-buffered (TILE_B, K) f32 inputs stay well under the scoped limit
    # on all of v5e/v6e/v7x).
    tile_b = min(max_tile_b, ((B + 127) // 128) * 128)
    b_pad = pl.cdiv(B, tile_b) * tile_b
    pad = b_pad - B

    u = user_embed
    v = item_embed
    if pad:
        u = jnp.pad(u, ((0, pad), (0, 0)))
        v = jnp.pad(v, ((0, pad), (0, 0)))

    grid = (b_pad // tile_b,)

    out_row = pl.pallas_call(
        _mf_dot_kernel,
        out_shape=jax.ShapeDtypeStruct((1, b_pad), jnp.float32),
        grid_spec=pltpu.PrefetchScalarGridSpec(
            num_scalar_prefetch=0,
            grid=grid,
            in_specs=[
                pl.BlockSpec((tile_b, K), lambda i: (i, 0)),
                pl.BlockSpec((tile_b, K), lambda i: (i, 0)),
            ],
            out_specs=pl.BlockSpec((1, tile_b), lambda i: (0, i)),
        ),
        compiler_params=pltpu.CompilerParams(
            dimension_semantics=("parallel",),
        ),
    )(u, v)

    out = out_row[0, :B].reshape(B, 1)
    return out, user_embed, item_embed


def _reference_forward(x, params):
    """Pure-JAX reference for correctness check."""
    user_embed = jnp.take(params["user_emb"], x[:, 0], axis=0)
    item_embed = jnp.take(params["item_emb"], x[:, 1], axis=0)
    out = jnp.sum(user_embed * item_embed, axis=1, keepdims=True)
    return out, user_embed, item_embed


if __name__ == "__main__":
    num_users = 16
    num_items = 32
    embedding_k = 32
    batch = 8

    key = jax.random.PRNGKey(0)
    pkey, ukey, ikey = jax.random.split(key, 3)

    params = init_params(pkey, num_users, num_items, embedding_k)

    user_idx = jax.random.randint(ukey, (batch,), 0, num_users, dtype=jnp.int32)
    item_idx = jax.random.randint(ikey, (batch,), 0, num_items, dtype=jnp.int32)
    x = jnp.stack([user_idx, item_idx], axis=1)   # (B, 2) int32

    out, u_emb, i_emb = jax.block_until_ready(mf_forward(x, params))

    # Cross-check against the pure-JAX reference.
    out_r, u_r, i_r = _reference_forward(x, params)
    assert out.shape == (batch, 1)
    assert u_emb.shape == (batch, embedding_k)
    assert i_emb.shape == (batch, embedding_k)
    assert jnp.allclose(out, out_r, atol=1e-5)
    assert jnp.allclose(u_emb, u_r, atol=1e-6)
    assert jnp.allclose(i_emb, i_r, atol=1e-6)

    print("KERNEL_OK")
</pallas_src>

<mosaic_0001>
module attributes {stable_mosaic.version = 11 : i64} {
  func.func @_mf_dot_kernel(%arg0: i32, %arg1: memref<128x32xf32, #tpu.memory_space<vmem>>, %arg2: memref<128x32xf32, #tpu.memory_space<vmem>>, %arg3: memref<1x128xf32, #tpu.memory_space<vmem>>) attributes {dimension_semantics = [#tpu.dimension_semantics<parallel>], iteration_bounds = array<i64: 1>, scalar_prefetch = 0 : i64, scratch_operands = 0 : i64, tpu.core_type = #tpu.core_type<tc>, window_params = [{transform_indices = @transform_0, window_bounds = array<i64: 128, 32>}, {transform_indices = @transform_1, window_bounds = array<i64: 128, 32>}, {transform_indices = @transform_2, window_bounds = array<i64: 1, 128>}]} {
    %c0 = arith.constant 0 : index
    %c0_0 = arith.constant 0 : index
    %0 = vector.load %arg1[%c0, %c0_0] : memref<128x32xf32, #tpu.memory_space<vmem>>, vector<128x32xf32>
    %c0_1 = arith.constant 0 : index
    %c0_2 = arith.constant 0 : index
    %1 = vector.load %arg2[%c0_1, %c0_2] : memref<128x32xf32, #tpu.memory_space<vmem>>, vector<128x32xf32>
    %2 = arith.mulf %0, %1 : vector<128x32xf32>
    %cst = arith.constant dense<0.000000e+00> : vector<128xf32>
    %3 = vector.multi_reduction <add>, %2, %cst [1] : vector<128x32xf32> to vector<128xf32>
    %4 = vector.shape_cast %3 : vector<128xf32> to vector<1x128xf32>
    %c0_3 = arith.constant 0 : index
    %c0_4 = arith.constant 0 : index
    %5 = vector.load %arg3[%c0_3, %c0_4] : memref<1x128xf32, #tpu.memory_space<vmem>>, vector<1x128xf32>
    tpu.vector_store %arg3[%c0_3, %c0_4], %4 {strides = array<i32>} : memref<1x128xf32, #tpu.memory_space<vmem>>, vector<1x128xf32>,
    return
  }
  func.func @transform_0(%arg0: i32) -> (i32, i32) {
    %c0_i32 = arith.constant 0 : i32
    %c0_i32_0 = arith.constant 0 : i32
    return %arg0, %c0_i32 : i32, i32
  }
  func.func @transform_1(%arg0: i32) -> (i32, i32) {
    %c0_i32 = arith.constant 0 : i32
    %c0_i32_0 = arith.constant 0 : i32
    return %arg0, %c0_i32 : i32, i32
  }
  func.func @transform_2(%arg0: i32) -> (i32, i32) {
    %c0_i32 = arith.constant 0 : i32
    %c0_i32_0 = arith.constant 0 : i32
    return %c0_i32, %arg0 : i32, i32
  }
}

</mosaic_0001>

<bundles_post_ra>
// kernel: tpu_custom_call.1
= control target key start
LH: loop header
LB: loop body
LE: loop exit
PB: predicated region body
PF: predicated region fallthrough
CT: control target
= control target key end

     0   :  { %vm60_vm0 = vcmask 261120   ;;  %s453_s0 = inlined_call_operand.vmem [shape: f32[128,32], index: 0, kind: input, shape index: {}]   ;;  %s454_s1 = inlined_call_operand.vmem [shape: f32[128,32], index: 1, kind: input, shape index: {}]   ;;  %s455_s2 = inlined_call_operand.hbm [shape: f32[1,128], index: 2, kind: output, shape index: {}]  }
   0x1   :  { %v12_v0 = vld [vmem:[%s453_s0] sm:$0xff]  ;;  %v14_v2 = vld [vmem:[%s453_s0 + $0x10] sm:$0xff]  ;;  %v13_v5 = vld [vmem:[%s453_s0 + $0x8] sm:$0xff] }
   0x2   :  { %v28_v1 = vld [vmem:[%s454_s1] sm:$0xff]  ;;  %v30_v4 = vld [vmem:[%s454_s1 + $0x10] sm:$0xff]  ;;  %v29_v6 = vld [vmem:[%s454_s1 + $0x8] sm:$0xff] }
   0x3   :  { %v44_v3 = vmul.f32 %v28_v1, %v12_v0  ;;  %v46_v7 = vmul.f32 %v30_v4, %v14_v2  ;;  %v45_v8 = vmul.f32 %v29_v6, %v13_v5  ;;  %v15_v9 = vld [vmem:[%s453_s0 + $0x18] sm:$0xff]  ;;  %v16_v11 = vld [vmem:[%s453_s0 + $0x20] sm:$0xff]  ;;  %v17_v15 = vld [vmem:[%s453_s0 + $0x28] sm:$0xff] }
   0x4   :  { %v31_v10 = vld [vmem:[%s454_s1 + $0x18] sm:$0xff]  ;;  %v32_v14 = vld [vmem:[%s454_s1 + $0x20] sm:$0xff]  ;;  %v33_v16 = vld [vmem:[%s454_s1 + $0x28] sm:$0xff] }
   0x5   :  { %v61_v12 = vsel %vm60_vm0, %v44_v3, 0.0  ;;  %v47_v13 = vmul.f32 %v31_v10, %v15_v9  ;;  %v67_v17 = vsel %vm60_vm0, %v46_v7, 0.0  ;;  %v64_v18 = vsel %vm60_vm0, %v45_v8, 0.0  ;;  %v18_v22 = vld [vmem:[%s453_s0 + $0x30] sm:$0xff]  ;;  %v19_v24 = vld [vmem:[%s453_s0 + $0x38] sm:$0xff]  ;;  %v20_v30 = vld [vmem:[%s453_s0 + $0x40] sm:$0xff] }
   0x6   :  { %62 = vadd.xlane.f32.xlu0 %v61_v12  ;;  %68 = vadd.xlane.f32.xlu1 %v67_v17  ;;  %v48_v19 = vmul.f32 %v32_v14, %v16_v11  ;;  %v49_v21 = vmul.f32 %v33_v16, %v17_v15  ;;  %v34_v23 = vld [vmem:[%s454_s1 + $0x30] sm:$0xff]  ;;  %v35_v25 = vld [vmem:[%s454_s1 + $0x38] sm:$0xff]  ;;  %v36_v31 = vld [vmem:[%s454_s1 + $0x40] sm:$0xff] }
   0x7   :  { %v70_v20 = vsel %vm60_vm0, %v47_v13, 0.0  ;;  %v50_v27 = vmul.f32 %v34_v23, %v18_v22  ;;  %v51_v29 = vmul.f32 %v35_v25, %v19_v24 }
   0x8   :  { %v73_v26 = vsel %vm60_vm0, %v48_v19, 0.0  ;;  %v76_v28 = vsel %vm60_vm0, %v49_v21, 0.0 }
   0xa   :  { %65 = vadd.xlane.f32.xlu0 %v64_v18  ;;  %71 = vadd.xlane.f32.xlu1 %v70_v20 }
   0xb   :  { %7 = vsyncpa [#allocation3], 0  ;;  %v21_v32 = vld [vmem:[%s453_s0 + $0x48] sm:$0xff]  ;;  %v79_v34 = vsel %vm60_vm0, %v50_v27, 0.0  ;;  %v52_v35 = vmul.f32 %v36_v31, %v20_v30  ;;  %v82_v36 = vsel %vm60_vm0, %v51_v29, 0.0  ;;  %v22_v38 = vld [vmem:[%s453_s0 + $0x50] sm:$0xff]  ;;  %v125_v0 = vlaneseq }
   0xc   :  { %v37_v33 = vld [vmem:[%s454_s1 + $0x48] sm:$0xff]  ;;  %v38_v39 = vld [vmem:[%s454_s1 + $0x50] sm:$0xff]  ;;  %v23_v40 = vld [vmem:[%s453_s0 + $0x58] sm:$0xff]  ;;  %vm136_vm1 = vcmask 130112   ;;  %vm143_vm2 = vcmask 195712   ;;  %vm150_vm3 = vcmask 261312  }
   0xd   :  { %v53_v37 = vmul.f32 %v37_v33, %v21_v32  ;;  %v39_v41 = vld [vmem:[%s454_s1 + $0x58] sm:$0xff]  ;;  %v85_v42 = vsel %vm60_vm0, %v52_v35, 0.0  ;;  %v54_v43 = vmul.f32 %v38_v39, %v22_v38  ;;  %v24_v46 = vld [vmem:[%s453_s0 + $0x60] sm:$0xff]  ;;  %v25_v48 = vld [vmem:[%s453_s0 + $0x68] sm:$0xff]  ;;  %v405_v1 = vand.u32 127, %v125_v0 }
   0xe   :  { %74 = vadd.xlane.f32.xlu0 %v73_v26  ;;  %77 = vadd.xlane.f32.xlu1 %v76_v28  ;;  %v55_v45 = vmul.f32 %v39_v41, %v23_v40  ;;  %v40_v47 = vld [vmem:[%s454_s1 + $0x60] sm:$0xff]  ;;  %v41_v49 = vld [vmem:[%s454_s1 + $0x68] sm:$0xff]  ;;  %v26_v54 = vld [vmem:[%s453_s0 + $0x70] sm:$0xff]  ;;  %v407_v2 = vshrl.u32 %v125_v0, 7  ;;  %vm157_vm4 = vcmask 326912   ;;  %vm164_vm5 = vcmask 392512  }
   0xf   :  { %v88_v44 = vsel %vm60_vm0, %v53_v37, 0.0  ;;  %v91_v50 = vsel %vm60_vm0, %v54_v43, 0.0  ;;  %v56_v51 = vmul.f32 %v40_v47, %v24_v46  ;;  %v57_v53 = vmul.f32 %v41_v49, %v25_v48  ;;  %v42_v55 = vld [vmem:[%s454_s1 + $0x70] sm:$0xff]  ;;  %v27_v56 = vld [vmem:[%s453_s0 + $0x78] sm:$0xff]  ;;  %s277_s0 = smov [#allocation2]  }
  0x10   :  { %v94_v52 = vsel %vm60_vm0, %v55_v45, 0.0  ;;  %v43_v57 = vld [vmem:[%s454_s1 + $0x78] sm:$0xff]  ;;  %v58_v59 = vmul.f32 %v42_v55, %v26_v54  ;;  %v131_v3 = vadd.s32 4294967288, %v405_v1  ;;  %v138_v4 = vadd.s32 4294967280, %v405_v1  ;;  %s244_s1 = sshll.u32 %s277_s0, 4  ;;  %s245_s1 = int_to_ptr.vmem [resolvable:$true] %s244_s1 }
  0x11   :  { %v97_v58 = vsel %vm60_vm0, %v56_v51, 0.0  ;;  %v100_v60 = vsel %vm60_vm0, %v57_v53, 0.0  ;;  %v59_v61 = vmul.f32 %v43_v57, %v27_v56  ;;  %v145_v5 = vadd.s32 4294967272, %v405_v1  ;;  %s253_s17 = scalar_lea.vmem %s245_s1, 16  ;;  %s257_s18 = scalar_lea.vmem %s245_s1, 32 }
  0x12   :  { %80 = vadd.xlane.f32.xlu0 %v79_v34  ;;  %83 = vadd.xlane.f32.xlu1 %v82_v36  ;;  %v103_v62 = vsel %vm60_vm0, %v58_v59, 0.0  ;;  %v129_v7 = vsub.s32 %v405_v1, %v407_v2  ;;  %v134_v9 = vsub.s32 %v131_v3, %v407_v2  ;;  %v152_v10 = vadd.s32 4294967264, %v405_v1  ;;  %p254_p0 = scmp.ne.s32.totalorder %s245_s1, %s253_s17  ;;  %p258_p1 = scmp.lt.s32.totalorder %s245_s1, %s245_s1 }
  0x13   :  { %v106_v63 = vsel %vm60_vm0, %v59_v61, 0.0  ;;  %v141_v11 = vsub.s32 %v138_v4, %v407_v2  ;;  %v148_v12 = vsub.s32 %v145_v5, %v407_v2  ;;  %v159_v13 = vadd.s32 4294967256, %v405_v1  ;;  %p259_p2 = scmp.lt.s32.totalorder %s257_s18, %s253_s17 }
  0x14   :  { %v155_v18 = vsub.s32 %v152_v10, %v407_v2  ;;  %v166_v19 = vadd.s32 4294967248, %v405_v1  ;;  %v173_v23 = vadd.s32 4294967240, %v405_v1  ;;  %v180_v31 = vadd.s32 4294967232, %v405_v1 }
  0x15   :  { %v162_v22 = vsub.s32 %v159_v13, %v407_v2  ;;  %v187_v34 = vadd.s32 4294967224, %v405_v1  ;;  %vm171_vm6 = vcmask 458112   ;;  %v194_v40 = vadd.s32 4294967216, %v405_v1  ;;  %p260_p3 = por %p259_p2, %p258_p1 }
  0x16   :  { %86 = vadd.xlane.f32.xlu0 %v85_v42  ;;  %89 = vadd.xlane.f32.xlu1 %v88_v44  ;;  %v169_v30 = vsub.s32 %v166_v19, %v407_v2  ;;  %v176_v33 = vsub.s32 %v173_v23, %v407_v2  ;;  %v183_v39 = vsub.s32 %v180_v31, %v407_v2  ;;  %v201_v44 = vadd.s32 4294967208, %v405_v1 }
  0x17   :  { %v190_v43 = vsub.s32 %v187_v34, %v407_v2  ;;  %vm178_vm7 = vcmask 523712   ;;  %vm185_vm8 = vcmask 589312   ;;  %v197_v49 = vsub.s32 %v194_v40, %v407_v2  ;;  %p261_p4 = pnand %p260_p3, %p254_p0 }
  0x18   :  { %v204_v53 = vsub.s32 %v201_v44, %v407_v2  ;;  %v215_v54 = vadd.s32 4294967192, %v405_v1  ;;  %vm192_vm9 = vcmask 654912   ;;  %vm199_vm10 = vcmask 720512  }
  0x19   :  { %v229_v0 = vadd.s32 4294967176, %v405_v1  ;;  %vm206_vm11 = vcmask 786112   ;;  %vm213_vm12 = vcmask 851712   ;;  %vm220_vm13 = vcmask 917312  }
  0x1a   :  { %92 = vadd.xlane.f32.xlu0 %v91_v50  ;;  %95 = vadd.xlane.f32.xlu1 %v94_v52  ;;  %v208_v50 = vadd.s32 4294967200, %v405_v1  ;;  %vm227_vm14 = vcmask 982912   ;;  %vm234_vm15 = vcmask 1048512  }
  0x1b   :  { %v232_v10 = vsub.s32 %v229_v0, %v407_v2 }
  0x1c   :  { %v211_v59 = vsub.s32 %v208_v50, %v407_v2 }
  0x1e   :  { %98 = vadd.xlane.f32.xlu0 %v97_v58  ;;  %101 = vadd.xlane.f32.xlu1 %v100_v60  ;;  %v222_v60 = vadd.s32 4294967184, %v405_v1 }
  0x22   :  { %104 = vadd.xlane.f32.xlu0 %v103_v62  ;;  %107 = vadd.xlane.f32.xlu1 %v106_v63  ;;  %v218_v63 = vsub.s32 %v215_v54, %v407_v2 }
  0x93   :  { %v63_v6 = vpop.xlane.xlu0 %62  ;;  %v69_v8 = vpop.xlane.xlu1 %68 }
  0x94   :  { %v130_v15 = vrot.slane %v63_v6, %v129_v7  ;;  %v142_v20 = vrot.slane %v69_v8, %v141_v11  ;;  %v225_v7 = vsub.s32 %v222_v60, %v407_v2 }
  0x97   :  { %v66_v14 = vpop.xlane.xlu0 %65  ;;  %v72_v17 = vpop.xlane.xlu1 %71 }
  0x98   :  { %v135_v16 = vrot.slane %v66_v14, %v134_v9  ;;  %v149_v21 = vrot.slane %v72_v17, %v148_v12 }
  0x9a   :  { %v137_v24 = vsel %vm136_vm1, %v135_v16, %v130_v15 }
  0x9b   :  { %v144_v25 = vsel %vm143_vm2, %v142_v20, %v137_v24  ;;  %v75_v26 = vpop.xlane.xlu0 %74  ;;  %v78_v29 = vpop.xlane.xlu1 %77 }
  0x9c   :  { %v151_v27 = vsel %vm150_vm3, %v149_v21, %v144_v25  ;;  %v156_v28 = vrot.slane %v75_v26, %v155_v18  ;;  %v163_v32 = vrot.slane %v78_v29, %v162_v22 }
  0x9e   :  { %v158_v35 = vsel %vm157_vm4, %v156_v28, %v151_v27 }
  0x9f   :  { %v81_v36 = vpop.xlane.xlu0 %80  ;;  %v84_v38 = vpop.xlane.xlu1 %83  ;;  %v165_v41 = vsel %vm164_vm5, %v163_v32, %v158_v35 }
  0xa0   :  { %v170_v37 = vrot.slane %v81_v36, %v169_v30  ;;  %v177_v42 = vrot.slane %v84_v38, %v176_v33 }
  0xa2   :  { %v172_v45 = vsel %vm171_vm6, %v170_v37, %v165_v41 }
  0xa3   :  { %v87_v46 = vpop.xlane.xlu0 %86  ;;  %v90_v48 = vpop.xlane.xlu1 %89  ;;  %v179_v51 = vsel %vm178_vm7, %v177_v42, %v172_v45 }
  0xa4   :  { %v184_v47 = vrot.slane %v87_v46, %v183_v39  ;;  %v191_v52 = vrot.slane %v90_v48, %v190_v43 }
  0xa6   :  { %v186_v55 = vsel %vm185_vm8, %v184_v47, %v179_v51 }
  0xa7   :  { %v93_v56 = vpop.xlane.xlu0 %92  ;;  %v96_v58 = vpop.xlane.xlu1 %95  ;;  %v193_v61 = vsel %vm192_vm9, %v191_v52, %v186_v55 }
  0xa8   :  { %v198_v57 = vrot.slane %v93_v56, %v197_v49  ;;  %v205_v62 = vrot.slane %v96_v58, %v204_v53 }
  0xaa   :  { %v200_v3 = vsel %vm199_vm10, %v198_v57, %v193_v61 }
  0xab   :  { %v99_v4 = vpop.xlane.xlu0 %98  ;;  %v102_v6 = vpop.xlane.xlu1 %101  ;;  %v207_v8 = vsel %vm206_vm11, %v205_v62, %v200_v3 }
  0xac   :  { %v212_v5 = vrot.slane %v99_v4, %v211_v59  ;;  %v219_v9 = vrot.slane %v102_v6, %v218_v63 }
  0xae   :  { %v214_v11 = vsel %vm213_vm12, %v212_v5, %v207_v8 }
  0xaf   :  { %v105_v12 = vpop.xlane.xlu0 %104  ;;  %v108_v1 = vpop.xlane.xlu1 %107  ;;  %v221_v14 = vsel %vm220_vm13, %v219_v9, %v214_v11 }
  0xb0   :  { %v226_v13 = vrot.slane %v105_v12, %v225_v7  ;;  %v233_v15 = vrot.slane %v108_v1, %v232_v10 }
  0xb2   :  { %v228_v16 = vsel %vm227_vm14, %v226_v13, %v221_v14 }
  0xb3   :  { %v235_v17 = vsel %vm234_vm15, %v233_v15, %v228_v16 }
  0xb4   :  { %237 = vst [vmem:[#allocation2] sm:$0x1] %v235_v17 }
  0xb5   :  { %264 = shalt.err (!%p261_p4)
}
  0xb6   :  { %s265_s21 = scalar_lea.hbm %s455_s2, 16 }
  0xb7   :  { %p266_p5 = scmp.ne.s32.totalorder %s455_s2, %s265_s21  ;;  %p269_p6 = scmp.lt.u32.totalorder %s265_s21, %s455_s2 }
  0xb9   :  { %p271_p7 = pnand %p269_p6, %p266_p5 }
  0xbb   :  { %274 = shalt.err (!%p271_p7)
}
  0xbc   :  { %247 = dma.vmem_to_hbm [thread:$0]  %s245_s1, 16, %s455_s2, [#allocation3]  }
  0xbd   :  { %275 = dma.done.wait [#allocation3], 16  }
  0xbe   :  { %276 = vsyncadd [#allocation3], 4294967280 }
  0xbf   :  { %251 = vsyncpa [#allocation3], 1 }

</bundles_post_ra>
